<compile_context>
chip_gen: v5e
topology: v5e:2x2
jax: 0.10.0
libtpu: 0.0.40
codegen_flags: <defaults>
</compile_context>

<pallas_src>
import functools

import jax
import jax.numpy as jnp
from jax.experimental import pallas as pl
from jax.experimental.pallas import tpu as pltpu


def _round_up(n: int, m: int) -> int:
    return ((n + m - 1) // m) * m


def hnup_kernel(x_ref, w1_ref, b1_ref, w2_ref, b2_ref, o_ref, *, compute_dtype):
    # x_ref:  (TB, F)  f32 (raw input tile, cast in-kernel)
    # w1_ref: (F, H)   f32 (resident across grid steps)
    # b1_ref: (1, H)   f32
    # w2_ref: (1, H)   f32 (second Linear weight row)
    # b2_ref: (1, 1)   f32, SMEM scalar
    # o_ref:  (1, TB)  f32 (lane-dense output row)
    x = x_ref[...].astype(compute_dtype)
    w1 = w1_ref[...].astype(compute_dtype)
    h = jnp.dot(x, w1, preferred_element_type=jnp.float32)          # (TB, H) f32
    h = jnp.maximum(h + b1_ref[...], 0.0)                           # bias + ReLU (VPU)
    # Second Linear (out_features=1): VPU multiply + XLU lane reduction.
    y = jnp.sum(h * w2_ref[...], axis=-1, keepdims=True)            # (TB, 1)
    y = y + b2_ref[0, 0]
    # (TB, 1) -> (1, TB): XLU relayout so the HBM writeback is an unmasked,
    # lane-dense store.
    o_ref[...] = jnp.transpose(y).astype(o_ref.dtype)


@functools.partial(jax.jit, static_argnames=("block_batch", "compute_dtype"))
def hnup_forward(x, w1, b1, w2, b2, *, block_batch=None,
                 compute_dtype=jnp.bfloat16):
    """y = relu(x @ w1 + b1) . w2 + b2.

    x: (B, F); w1: (F, H) (transpose of PyTorch layer-1 weight); b1: (1, H);
    w2: (1, H) (same layout as PyTorch layer-2 weight); b2: (1, 1).
    Returns (B, 1) float32.
    """
    B, F = x.shape
    H = w1.shape[1]

    if block_batch is None:
        # >= 2 grid steps when possible (v7x: both TensorCores busy), capped at
        # 512 (v5e/v6e: large tiles amortize per-step overhead).
        block_batch = min(512, _round_up(max(-(-B // 2), 128), 128))
    # Multiple of 128 so the lane-dense (1, block_batch) output block is legal.
    block_batch = _round_up(block_batch, 128)

    b1_f = b1.reshape(1, H).astype(jnp.float32)
    w2_f = w2.reshape(1, H).astype(jnp.float32)
    b2_f = b2.reshape(1, 1).astype(jnp.float32)
    x_f = x.astype(jnp.float32)
    w1_f = w1.astype(jnp.float32)

    grid = (pl.cdiv(B, block_batch),)
    grid_spec = pl.GridSpec(
        grid=grid,
        in_specs=[
            pl.BlockSpec((block_batch, F), lambda i: (i, 0)),     # x tile (unpadded F)
            pl.BlockSpec((F, H), lambda i: (0, 0)),               # W1 (resident)
            pl.BlockSpec((1, H), lambda i: (0, 0)),               # b1
            pl.BlockSpec((1, H), lambda i: (0, 0)),               # w2 row
            pl.BlockSpec(memory_space=pltpu.MemorySpace.SMEM),    # b2 scalar
        ],
        # Lane-dense output row per grid step.
        out_specs=pl.BlockSpec((1, block_batch), lambda i: (0, i)),
    )

    cost = pl.CostEstimate(
        flops=2 * B * F * H + 4 * B * H,
        transcendentals=0,
        bytes_accessed=(B * F + F * H + 2 * H + 1 + B) * 4,
    )

    out_row = pl.pallas_call(
        functools.partial(hnup_kernel, compute_dtype=compute_dtype),
        out_shape=jax.ShapeDtypeStruct((1, B), jnp.float32),
        grid_spec=grid_spec,
        compiler_params=pltpu.CompilerParams(
            dimension_semantics=("parallel",),
            vmem_limit_bytes=32 * 1024 * 1024,
        ),
        cost_estimate=cost,
    )(x_f, w1_f, b1_f, w2_f, b2_f)
    # (1, B) -> (B, 1): same flat layout, free.
    return out_row.reshape(B, 1)


def init_hnup_params(key, num_features, num_hidden):
    """Deterministic init mimicking PyTorch nn.Linear (uniform +-1/sqrt(fan_in)).

    w1: (F, H) (transposed vs. PyTorch), b1: (1, H),
    w2: (1, H) (same as PyTorch second-layer weight), b2: (1, 1).
    """
    k1, k2, k3, k4 = jax.random.split(key, 4)
    bound1 = 1.0 / jnp.sqrt(num_features)
    w1 = jax.random.uniform(k1, (num_features, num_hidden), jnp.float32, -bound1, bound1)
    b1 = jax.random.uniform(k2, (1, num_hidden), jnp.float32, -bound1, bound1)
    bound2 = 1.0 / jnp.sqrt(num_hidden)
    w2 = jax.random.uniform(k3, (1, num_hidden), jnp.float32, -bound2, bound2)
    b2 = jax.random.uniform(k4, (1, 1), jnp.float32, -bound2, bound2)
    return w1, b1, w2, b2


def hnup_reference(x, w1, b1, w2, b2, compute_dtype=jnp.float32):
    h = jnp.dot(x.astype(compute_dtype), w1.astype(compute_dtype),
                preferred_element_type=jnp.float32)
    h = jnp.maximum(h + b1, 0.0)
    return jnp.sum(h * w2, axis=-1, keepdims=True) + b2


if __name__ == "__main__":
    batch = 512            # auto block_batch=256 -> 2 "parallel" steps (both v7x TCs)
    num_features = 32      # stands in for fea.shape[1]
    num_hidden = 32

    key = jax.random.PRNGKey(0)
    kx, kp = jax.random.split(key)
    x = jax.random.normal(kx, (batch, num_features), jnp.float32)
    w1, b1, w2, b2 = init_hnup_params(kp, num_features, num_hidden)

    out = hnup_forward(x, w1, b1, w2, b2)
    out = jax.block_until_ready(out)
    assert out.shape == (batch, 1)

    # Same-cast reference (bf16 matmul operands, f32 accumulation): tolerance
    # covers MXU vs. jnp accumulation-order differences.
    ref_bf16 = hnup_reference(x, w1, b1, w2, b2, compute_dtype=jnp.bfloat16)
    assert jnp.allclose(out, ref_bf16, atol=1e-3, rtol=1e-3)

    # Full-f32 reference: loose sanity check on overall forward semantics
    # (bf16 compute is a documented deviation from full-f32 PyTorch).
    ref_f32 = hnup_reference(x, w1, b1, w2, b2, compute_dtype=jnp.float32)
    assert jnp.allclose(out, ref_f32, atol=5e-2, rtol=5e-2)

    print("KERNEL_OK")
</pallas_src>

<mosaic_0001>
module attributes {stable_mosaic.version = 11 : i64} {
  func.func @hnup_kernel(%arg0: i32, %arg1: memref<256x32xf32, #tpu.memory_space<vmem>>, %arg2: memref<32x32xf32, #tpu.memory_space<vmem>>, %arg3: memref<1x32xf32, #tpu.memory_space<vmem>>, %arg4: memref<1x32xf32, #tpu.memory_space<vmem>>, %arg5: memref<1x1xf32, #tpu.memory_space<smem>>, %arg6: memref<1x256xf32, #tpu.memory_space<vmem>>) attributes {dimension_semantics = [#tpu.dimension_semantics<parallel>], iteration_bounds = array<i64: 2>, scalar_prefetch = 0 : i64, scratch_operands = 0 : i64, tpu.core_type = #tpu.core_type<tc>, window_params = [{transform_indices = @transform_0, window_bounds = array<i64: 256, 32>}, {pipeline_mode = #tpu.pipeline_mode<synchronous>, transform_indices = @transform_1, window_bounds = array<i64: 32, 32>}, {pipeline_mode = #tpu.pipeline_mode<synchronous>, transform_indices = @transform_2, window_bounds = array<i64: 1, 32>}, {pipeline_mode = #tpu.pipeline_mode<synchronous>, transform_indices = @transform_3, window_bounds = array<i64: 1, 32>}, {transform_indices = @transform_4, window_bounds = array<i64: 1, 1>}, {transform_indices = @transform_5, window_bounds = array<i64: 1, 256>}]} {
    %c0 = arith.constant 0 : index
    %c0_0 = arith.constant 0 : index
    %0 = vector.load %arg1[%c0, %c0_0] : memref<256x32xf32, #tpu.memory_space<vmem>>, vector<256x32xf32>
    %1 = arith.truncf %0 : vector<256x32xf32> to vector<256x32xbf16>
    %c0_1 = arith.constant 0 : index
    %c0_2 = arith.constant 0 : index
    %2 = vector.load %arg2[%c0_1, %c0_2] : memref<32x32xf32, #tpu.memory_space<vmem>>, vector<32x32xf32>
    %3 = arith.truncf %2 : vector<32x32xf32> to vector<32x32xbf16>
    %cst = arith.constant dense<0.000000e+00> : vector<256x32xf32>
    %4 = tpu.matmul %1, %3, %cst {dimension_numbers = #tpu.dot_dimension_numbers<[1], [0], [0], [1], [0, 0, 1, 1], [], []>} : vector<256x32xbf16>, vector<32x32xbf16>, vector<256x32xf32> -> vector<256x32xf32>
    %c0_3 = arith.constant 0 : index
    %c0_4 = arith.constant 0 : index
    %5 = vector.load %arg3[%c0_3, %c0_4] : memref<1x32xf32, #tpu.memory_space<vmem>>, vector<1x32xf32>
    %6 = vector.broadcast %5 : vector<1x32xf32> to vector<256x32xf32>
    %7 = arith.addf %4, %6 : vector<256x32xf32>
    %cst_5 = arith.constant 0.000000e+00 : f32
    %8 = vector.broadcast %cst_5 : f32 to vector<256x32xf32>
    %9 = arith.maximumf %7, %8 : vector<256x32xf32>
    %c0_6 = arith.constant 0 : index
    %c0_7 = arith.constant 0 : index
    %10 = vector.load %arg4[%c0_6, %c0_7] : memref<1x32xf32, #tpu.memory_space<vmem>>, vector<1x32xf32>
    %11 = vector.broadcast %10 : vector<1x32xf32> to vector<256x32xf32>
    %12 = arith.mulf %9, %11 : vector<256x32xf32>
    %cst_8 = arith.constant dense<0.000000e+00> : vector<256xf32>
    %13 = vector.multi_reduction <add>, %12, %cst_8 [1] : vector<256x32xf32> to vector<256xf32>
    %14 = vector.shape_cast %13 : vector<256xf32> to vector<256x1xf32>
    %c0_9 = arith.constant 0 : index
    %c0_10 = arith.constant 0 : index
    %15 = memref.load %arg5[%c0_9, %c0_10] : memref<1x1xf32, #tpu.memory_space<smem>>
    %16 = vector.broadcast %15 : f32 to vector<256x1xf32>
    %17 = arith.addf %14, %16 : vector<256x1xf32>
    %18 = tpu.transpose %17, [1, 0] : vector<256x1xf32> -> vector<1x256xf32>
    %c0_11 = arith.constant 0 : index
    %c0_12 = arith.constant 0 : index
    %19 = vector.load %arg6[%c0_11, %c0_12] : memref<1x256xf32, #tpu.memory_space<vmem>>, vector<1x256xf32>
    tpu.vector_store %arg6[%c0_11, %c0_12], %18 {strides = array<i32>} : memref<1x256xf32, #tpu.memory_space<vmem>>, vector<1x256xf32>,
    return
  }
  func.func @transform_0(%arg0: i32) -> (i32, i32) {
    %c0_i32 = arith.constant 0 : i32
    %c0_i32_0 = arith.constant 0 : i32
    return %arg0, %c0_i32 : i32, i32
  }
  func.func @transform_1(%arg0: i32) -> (i32, i32) {
    %c0_i32 = arith.constant 0 : i32
    %c0_i32_0 = arith.constant 0 : i32
    %c0_i32_1 = arith.constant 0 : i32
    return %c0_i32, %c0_i32_0 : i32, i32
  }
  func.func @transform_2(%arg0: i32) -> (i32, i32) {
    %c0_i32 = arith.constant 0 : i32
    %c0_i32_0 = arith.constant 0 : i32
    %c0_i32_1 = arith.constant 0 : i32
    return %c0_i32, %c0_i32_0 : i32, i32
  }
  func.func @transform_3(%arg0: i32) -> (i32, i32) {
    %c0_i32 = arith.constant 0 : i32
    %c0_i32_0 = arith.constant 0 : i32
    %c0_i32_1 = arith.constant 0 : i32
    return %c0_i32, %c0_i32_0 : i32, i32
  }
  func.func @transform_4(%arg0: i32) -> (i32, i32) {
    %c0_i32 = arith.constant 0 : i32
    %c0_i32_0 = arith.constant 0 : i32
    %c0_i32_1 = arith.constant 0 : i32
    return %c0_i32, %c0_i32_0 : i32, i32
  }
  func.func @transform_5(%arg0: i32) -> (i32, i32) {
    %c0_i32 = arith.constant 0 : i32
    %c0_i32_0 = arith.constant 0 : i32
    return %c0_i32, %arg0 : i32, i32
  }
}

</mosaic_0001>

<bundles_post_ra>
// kernel: hnup_forward.1
= control target key start
LH: loop header
LB: loop body
LE: loop exit
PB: predicated region body
PF: predicated region fallthrough
CT: control target
= control target key end

     0   :  { %s1241_s0 = inlined_call_operand.vmem [shape: f32[512,32], index: 0, kind: input, shape index: {}]   ;;  %s1242_s1 = inlined_call_operand.vmem [shape: f32[32,32], index: 1, kind: input, shape index: {}]   ;;  %s1243_s2 = inlined_call_operand.vmem [shape: f32[1,32], index: 2, kind: input, shape index: {}]   ;;  %s1244_s3 = inlined_call_operand.vmem [shape: f32[1,32], index: 3, kind: input, shape index: {}]   ;;  %s1245_s4 = inlined_call_operand.<no memory space> [shape: f32[1,1], index: 4, kind: input, shape index: {}]   ;;  %s1246_s5 = inlined_call_operand.hbm [shape: f32[1,512], index: 5, kind: output, shape index: {}]  }
   0x1   :  { %10 = sst [smem:[#allocation2]] %s1245_s4 }
   0x2   :  { %11 = vsyncpa [#allocation4], 0 }
   0x3   :  { %13 = vsyncpa [#allocation4 + $0x1], 0  ;;  %s943_s20 = smov 0   ;;  %s945_s21 = smov 0  }
   0x4   :  { %s947_s22 = smov 0   ;;  %s949_s23 = smov 0  }
   0x5 LB: > { %s964_s4 = sadd.s32 4294967295, %s908_s23   ;;  %s772_s24 = sadd.s32 4294967294, %s908_s23   ;;  %s908_s23 = sphi %s949_s23, %s1252_s23   ;;  %s904_s22 = sphi %s947_s22, %s1251_s22   ;;  %s900_s21 = sphi %s945_s21, %s1250_s21   ;;  %s896_s20 = sphi %s943_s20, %s1249_s20  }
   0x6   : > { %s968_s25 = sadd.s32 1, %s908_s23   ;;  %s136_s26 = sadd.s32 1, %s904_s22 }
   0x7   : > { %s133_s27 = ssub.s32 %s908_s23, %s968_s25  ;;  %p146_p0 = scmp.ne.s32.totalorder %s904_s22, %s900_s21 }
   0x8   : > { %p134_p1 = scmp.eq.s32.totalorder %s133_s27, 0  ;;  %p147_p2 = scmp.eq.s32.totalorder %s964_s4, 1 }
   0x9   : > { %p152_p3 = scmp.ne.s32.totalorder %s900_s21, %s896_s20  ;;  %p153_p4 = scmp.eq.s32.totalorder %s772_s24, 1 }
   0xa   : > { %s979_s28 = scalar_select %p134_p1, %s904_s22, %s136_s26  }
   0xb   : > { %p981_p5 = por %p147_p2, %p146_p0  ;;  %p985_p6 = por %p153_p4, %p152_p3 }
   0xc   : > { %p775_p7 = scmp.ge.s32.totalorder %s908_s23, 1  ;;  %p192_p8 = scmp.lt.s32.totalorder %s908_s23, 3 }
   0xe   : > { %p193_p9 = pnand %p775_p7, %p192_p8 }
   0xf   : > { %s777_s12 = sshll.u32 (!%p193_p9), %s964_s4, 5  ;;  %s588_s6 = sld [smem:[#allocation2]] (!%p193_p9) }
  0x10   : > { %196 = sbr.rel (%p193_p9) target bundleno = 478 (0x1de), region = 40  ;;  %p221_p10 = scmp.lt.s32.totalorder (!%p193_p9), %s777_s12, 63 }
  0x11   : > { %s217_s7 = sand.u32 (!%p193_p9), 1, %s900_s21   ;;  %s796_s9 = sshll.u32 (!%p193_p9), %s964_s4, 1 }
  0x12   : > { %s776_s8 = sshll.u32 (!%p193_p9), %s217_s7, 1  ;;  %s698_s16 = scalar_lea.sflag (!%p193_p9), [#allocation4], %s217_s7 }
  0x13   : > { %s219_s13 = scalar_lea.vmem (!%p193_p9), [#allocation3], %s776_s8  ;;  %s866_s24 = scalar_lea.hbm (!%p193_p9), %s1246_s5, 4 }
  0x14   : > { %s710_s14 = sshll.u32 (!%p193_p9), %s219_s13, 4  ;;  %s711_s14 = int_to_ptr.vmem [resolvable:$true] %s710_s14 }
  0x15   : > { %v278_v0 = vld [vmem:[%s1242_s1 + $0x10] sm:$0xff]  ;;  %v279_v1 = vld [vmem:[%s1242_s1 + $0x18] sm:$0xff]  ;;  %v276_v2 = vld [vmem:[%s1242_s1] sm:$0xff]  ;;  %s1254_s12 = smov (!%p221_p10, %s777_s12), 63  ;;  %vm286_vm0 = vcmask 261120   ;;  %vm689_vm1 = vcmask 1040384  }
  0x16   : > { %v281_v3 = vpack.c.bf16 %v279_v1, %v278_v0  ;;  %v277_v4 = vld [vmem:[%s1242_s1 + $0x8] sm:$0xff]  ;;  %s778_s15 = sshll.u32 %s1254_s12, 3  ;;  %v1060_v54 = vld [vmem:[%s1243_s2] ss:$0 sm:$0xff]  ;;  %s708_s12 = scalar_lea.hbm %s1246_s5, %s796_s9 }
  0x17   : > { %v280_v5 = vpack.c.bf16 %v277_v4, %v276_v2  ;;  %s1007_s18 = scalar_lea.vmem %s1241_s0, %s778_s15  ;;  %v1066_v58 = vld [vmem:[%s1244_s3] ss:$0 sm:$0xff]  ;;  %s712_s15 = sshll.u32 %s708_s12, 4  ;;  %s713_s15 = int_to_ptr.hbm [resolvable:$true] %s712_s15 }
  0x18   : > { %341 = vmatpush.bf16.msra.mxu0 %v281_v3  ;;  %799 = vmatpush.bf16.msra.mxu1 %v281_v3  ;;  %v228_v6 = vld [vmem:[%s1007_s18] sm:$0xff]  ;;  %v229_v7 = vld [vmem:[%s1007_s18 + $0x8] sm:$0xff]  ;;  %v230_v18 = vld [vmem:[%s1007_s18 + $0x10] sm:$0xff]  ;;  %s860_s4 = sshra.s32 %s713_s15, 4  ;;  %s861_s4 = int_to_ptr.hbm [resolvable:$true] %s860_s4 }
  0x19   : > { %800 = vmatpush.bf16.msra.mxu2 %v281_v3  ;;  %801 = vmatpush.bf16.msra.mxu3 %v281_v3  ;;  %v236_v8 = vld [vmem:[%s1007_s18 + $0x40] sm:$0xff]  ;;  %v260_v9 = vpack.c.bf16 %v229_v7, %v228_v6  ;;  %v237_v10 = vld [vmem:[%s1007_s18 + $0x48] sm:$0xff]  ;;  %v231_v19 = vld [vmem:[%s1007_s18 + $0x18] sm:$0xff]  ;;  %s862_s17 = scalar_lea.hbm %s861_s4, 2  ;;  %p867_p0 = scmp.lt.s32.totalorder %s861_s4, %s1246_s5 }
  0x1a   : > { %v244_v11 = vld [vmem:[%s1007_s18 + $0x80] sm:$0xff]  ;;  %v245_v12 = vld [vmem:[%s1007_s18 + $0x88] sm:$0xff]  ;;  %v264_v13 = vpack.c.bf16 %v237_v10, %v236_v8  ;;  %v238_v20 = vld [vmem:[%s1007_s18 + $0x50] sm:$0xff]  ;;  %v261_v26 = vpack.c.bf16 %v231_v19, %v230_v18  ;;  %p863_p11 = scmp.ne.s32.totalorder %s861_s4, %s862_s17  ;;  %p868_p1 = scmp.lt.s32.totalorder %s866_s24, %s862_s17 }
  0x1b   : > { %v268_v14 = vpack.c.bf16 %v245_v12, %v244_v11  ;;  %v252_v15 = vld [vmem:[%s1007_s18 + $0xc0] sm:$0xff]  ;;  %v253_v16 = vld [vmem:[%s1007_s18 + $0xc8] sm:$0xff]  ;;  %v239_v21 = vld [vmem:[%s1007_s18 + $0x58] sm:$0xff] }
  0x1c   : > { %342 = vmatpush.bf16.msra.mxu0 %v280_v5  ;;  %802 = vmatpush.bf16.msra.mxu1 %v280_v5  ;;  %v272_v17 = vpack.c.bf16 %v253_v16, %v252_v15  ;;  %v246_v22 = vld [vmem:[%s1007_s18 + $0x90] sm:$0xff]  ;;  %v247_v23 = vld [vmem:[%s1007_s18 + $0x98] sm:$0xff]  ;;  %v265_v27 = vpack.c.bf16 %v239_v21, %v238_v20  ;;  %v232_v30 = vld [vmem:[%s1007_s18 + $0x20] sm:$0xff]  ;;  %p864_p12 = pnand %p863_p11, %p981_p5  ;;  %p869_p2 = por %p868_p1, %p867_p0 }
  0x1d   : > { %803 = vmatpush.bf16.msra.mxu2 %v280_v5  ;;  %804 = vmatpush.bf16.msra.mxu3 %v280_v5  ;;  %v254_v24 = vld [vmem:[%s1007_s18 + $0xd0] sm:$0xff]  ;;  %v255_v25 = vld [vmem:[%s1007_s18 + $0xd8] sm:$0xff]  ;;  %v269_v28 = vpack.c.bf16 %v247_v23, %v246_v22  ;;  %v233_v31 = vld [vmem:[%s1007_s18 + $0x28] sm:$0xff] }
  0x1e   : > { %v273_v29 = vpack.c.bf16 %v255_v25, %v254_v24  ;;  %v240_v32 = vld [vmem:[%s1007_s18 + $0x60] sm:$0xff]  ;;  %v241_v33 = vld [vmem:[%s1007_s18 + $0x68] sm:$0xff]  ;;  %v262_v38 = vpack.c.bf16 %v233_v31, %v232_v30  ;;  %v242_v42 = vld [vmem:[%s1007_s18 + $0x70] sm:$0xff]  ;;  %p865_p13 = pneg %p864_p12 }
  0x1f   : > { %779 = vmatmul.msk.bf16.vlgmr.msra.gmra.mxu0 %vm286_vm0, %v260_v9  ;;  %783 = vmatmul.msk.bf16.vlgmr.msra.gmra.mxu1 %vm286_vm0, %v264_v13  ;;  %v248_v34 = vld [vmem:[%s1007_s18 + $0xa0] sm:$0xff]  ;;  %v249_v35 = vld [vmem:[%s1007_s18 + $0xa8] sm:$0xff]  ;;  %v266_v39 = vpack.c.bf16 %v241_v33, %v240_v32  ;;  %v234_v43 = vld [vmem:[%s1007_s18 + $0x30] sm:$0xff] }
  0x20   : > { %787 = vmatmul.msk.bf16.vlgmr.msra.gmra.mxu2 %vm286_vm0, %v268_v14  ;;  %791 = vmatmul.msk.bf16.vlgmr.msra.gmra.mxu3 %vm286_vm0, %v272_v17  ;;  %v256_v36 = vld [vmem:[%s1007_s18 + $0xe0] sm:$0xff]  ;;  %v257_v37 = vld [vmem:[%s1007_s18 + $0xe8] sm:$0xff]  ;;  %v270_v40 = vpack.c.bf16 %v249_v35, %v248_v34  ;;  %v235_v44 = vld [vmem:[%s1007_s18 + $0x38] sm:$0xff]  ;;  %p870_p3 = pnand %p869_p2, %p865_p13 }
  0x21   : > { %v274_v41 = vpack.c.bf16 %v257_v37, %v256_v36  ;;  %v243_v45 = vld [vmem:[%s1007_s18 + $0x78] sm:$0xff]  ;;  %v250_v46 = vld [vmem:[%s1007_s18 + $0xb0] sm:$0xff]  ;;  %v263_v50 = vpack.c.bf16 %v235_v44, %v234_v43 }
  0x22   : > { %v251_v47 = vld [vmem:[%s1007_s18 + $0xb8] sm:$0xff]  ;;  %v258_v48 = vld [vmem:[%s1007_s18 + $0xf0] sm:$0xff]  ;;  %v267_v51 = vpack.c.bf16 %v243_v45, %v242_v42 }
  0x23   : > { %v259_v49 = vld [vmem:[%s1007_s18 + $0xf8] sm:$0xff]  ;;  %v271_v52 = vpack.c.bf16 %v251_v47, %v250_v46 }
  0x24   : > { %v275_v53 = vpack.c.bf16 %v259_v49, %v258_v48 }
  0x2f   : > { %780 = vmatmul.msk.bf16.gmra.mxu0 %vm286_vm0, %v261_v26  ;;  %784 = vmatmul.msk.bf16.gmra.mxu1 %vm286_vm0, %v265_v27 }
  0x30   : > { %788 = vmatmul.msk.bf16.gmra.mxu2 %vm286_vm0, %v269_v28  ;;  %792 = vmatmul.msk.bf16.gmra.mxu3 %vm286_vm0, %v273_v29 }
  0x3f   : > { %781 = vmatmul.msk.bf16.gmra.mxu0 %vm286_vm0, %v262_v38  ;;  %785 = vmatmul.msk.bf16.gmra.mxu1 %vm286_vm0, %v266_v39 }
  0x40   : > { %789 = vmatmul.msk.bf16.gmra.mxu2 %vm286_vm0, %v270_v40  ;;  %793 = vmatmul.msk.bf16.gmra.mxu3 %vm286_vm0, %v274_v41 }
  0x4f   : > { %782 = vmatmul.msk.bf16.gmra.mxu0 %vm286_vm0, %v263_v50  ;;  %786 = vmatmul.msk.bf16.gmra.mxu1 %vm286_vm0, %v267_v51 }
  0x50   : > { %790 = vmatmul.msk.bf16.gmra.mxu2 %vm286_vm0, %v271_v52  ;;  %794 = vmatmul.msk.bf16.gmra.mxu3 %vm286_vm0, %v275_v53 }
  0x9c   : > { %v344_v55 = vpop.f32.mrf.mxu0  ;;  %v364_v57 = vpop.f32.mrf.mxu1 }
  0x9d   : > { %v345_v56 = vadd.f32 %v1060_v54, %v344_v55  ;;  %v365_v59 = vadd.f32 %v1060_v54, %v364_v57 }
  0x9f   : > { %v424_v60 = vmax.f32 %v345_v56, 0.0  ;;  %v432_v61 = vmax.f32 %v365_v59, 0.0 }
  0xa1   : > { %v460_v62 = vmul.f32 %v1066_v58, %v424_v60  ;;  %v468_v63 = vmul.f32 %v1066_v58, %v432_v61 }
  0xa3   : > { %v384_v0 = vpop.f32.mrf.mxu2  ;;  %v492_v1 = vsel %vm286_vm0, %v460_v62, 0.0  ;;  %v404_v3 = vpop.f32.mrf.mxu3  ;;  %v516_v4 = vsel %vm286_vm0, %v468_v63, 0.0 }
  0xa4   : > { %v385_v2 = vadd.f32 %v1060_v54, %v384_v0  ;;  %v346_v5 = vpop.f32.mrf.mxu0  ;;  %493 = vadd.xlane.f32.xlu0 %v492_v1  ;;  %v366_v6 = vpop.f32.mrf.mxu1  ;;  %v405_v7 = vadd.f32 %v1060_v54, %v404_v3  ;;  %517 = vadd.xlane.f32.xlu2 %v516_v4 }
  0xa5   : > { %v347_v10 = vadd.f32 %v1060_v54, %v346_v5  ;;  %v367_v23 = vadd.f32 %v1060_v54, %v366_v6 }
  0xa6   : > { %v440_v8 = vmax.f32 %v385_v2, 0.0  ;;  %v448_v9 = vmax.f32 %v405_v7, 0.0 }
  0xa7   : > { %v425_v14 = vmax.f32 %v347_v10, 0.0  ;;  %v433_v33 = vmax.f32 %v367_v23, 0.0 }
  0xa8   : > { %v476_v11 = vmul.f32 %v1066_v58, %v440_v8  ;;  %v484_v12 = vmul.f32 %v1066_v58, %v448_v9 }
  0xa9   : > { %v461_v28 = vmul.f32 %v1066_v58, %v425_v14  ;;  %v469_v46 = vmul.f32 %v1066_v58, %v433_v33 }
  0xaa   : > { %v540_v13 = vsel %vm286_vm0, %v476_v11, 0.0  ;;  %v564_v16 = vsel %vm286_vm0, %v484_v12, 0.0 }
  0xab   : > { %v386_v15 = vpop.f32.mrf.mxu2  ;;  %541 = vadd.xlane.f32.xlu1 %v540_v13  ;;  %v406_v19 = vpop.f32.mrf.mxu3  ;;  %v495_v37 = vsel %vm286_vm0, %v461_v28, 0.0  ;;  %v519_v56 = vsel %vm286_vm0, %v469_v46, 0.0 }
  0xac   : > { %v387_v17 = vadd.f32 %v1060_v54, %v386_v15  ;;  %v349_v18 = vpop.f32.mrf.mxu0  ;;  %565 = vadd.xlane.f32.xlu0 %v564_v16  ;;  %v369_v21 = vpop.f32.mrf.mxu1  ;;  %v407_v22 = vadd.f32 %v1060_v54, %v406_v19 }
  0xad   : > { %v350_v20 = vadd.f32 %v1060_v54, %v349_v18  ;;  %v370_v26 = vadd.f32 %v1060_v54, %v369_v21 }
  0xae   : > { %v441_v24 = vmax.f32 %v387_v17, 0.0  ;;  %v449_v27 = vmax.f32 %v407_v22, 0.0 }
  0xaf   : > { %v426_v25 = vmax.f32 %v350_v20, 0.0  ;;  %v434_v34 = vmax.f32 %v370_v26, 0.0 }
  0xb0   : > { %v477_v29 = vmul.f32 %v1066_v58, %v441_v24  ;;  %v1089_v31 = vmul.f32 %v1066_v58, %v449_v27 }
  0xb1   : > { %v462_v30 = vmul.f32 %v1066_v58, %v426_v25  ;;  %v470_v45 = vmul.f32 %v1066_v58, %v434_v34 }
  0xb2   : > { %v543_v32 = vsel %vm286_vm0, %v477_v29, 0.0 }
  0xb3   : > { %v389_v35 = vpop.f32.mrf.mxu2  ;;  %544 = vadd.xlane.f32.xlu2 %v543_v32  ;;  %v498_v36 = vsel %vm286_vm0, %v462_v30, 0.0  ;;  %v409_v39 = vpop.f32.mrf.mxu3  ;;  %v522_v55 = vsel %vm286_vm0, %v470_v45, 0.0 }
  0xb4   : > { %v351_v38 = vpop.f32.mrf.mxu0  ;;  %499 = vadd.xlane.f32.xlu1 %v498_v36  ;;  %496 = vadd.xlane.f32.xlu0 %v495_v37  ;;  %v371_v40 = vpop.f32.mrf.mxu1  ;;  %v410_v41 = vadd.f32 %v1060_v54, %v409_v39  ;;  %v390_v42 = vadd.f32 %v1060_v54, %v389_v35 }
  0xb5   : > { %v372_v43 = vadd.f32 %v1060_v54, %v371_v40  ;;  %v352_v44 = vadd.f32 %v1060_v54, %v351_v38 }
  0xb6   : > { %v450_v47 = vmax.f32 %v410_v41, 0.0  ;;  %v442_v50 = vmax.f32 %v390_v42, 0.0 }
  0xb7   : > { %v435_v48 = vmax.f32 %v372_v43, 0.0  ;;  %v427_v52 = vmax.f32 %v352_v44, 0.0 }
  0xb8   : > { %v1101_v49 = vmul.f32 %v1066_v58, %v450_v47  ;;  %v478_v1 = vmul.f32 %v1066_v58, %v442_v50 }
  0xb9   : > { %v471_v51 = vmul.f32 %v1066_v58, %v435_v48  ;;  %v463_v4 = vmul.f32 %v1066_v58, %v427_v52 }
  0xba   : > { %v546_v13 = vsel %vm286_vm0, %v478_v1, 0.0 }
  0xbb   : > { %v391_v53 = vpop.f32.mrf.mxu2  ;;  %v525_v57 = vsel %vm286_vm0, %v471_v51, 0.0  ;;  %v411_v60 = vpop.f32.mrf.mxu3  ;;  %v501_v12 = vsel %vm286_vm0, %v463_v4, 0.0 }
  0xbc   : > { %v354_v59 = vpop.f32.mrf.mxu0  ;;  %523 = vadd.xlane.f32.xlu1 %v522_v55  ;;  %520 = vadd.xlane.f32.xlu0 %v519_v56  ;;  %v374_v61 = vpop.f32.mrf.mxu1  ;;  %v412_v63 = vadd.f32 %v1060_v54, %v411_v60  ;;  %v392_v2 = vadd.f32 %v1060_v54, %v391_v53 }
  0xbd   : > { %526 = vadd.xlane.f32.xlu2 %v525_v57  ;;  %v355_v62 = vadd.f32 %v1060_v54, %v354_v59  ;;  %v375_v0 = vadd.f32 %v1060_v54, %v374_v61 }
  0xbe   : > { %v451_v5 = vmax.f32 %v412_v63, 0.0  ;;  %v443_v9 = vmax.f32 %v392_v2, 0.0 }
  0xbf   : > { %v428_v3 = vmax.f32 %v355_v62, 0.0  ;;  %v436_v6 = vmax.f32 %v375_v0, 0.0 }
  0xc0   : > { %v1115_v8 = vmul.f32 %v1066_v58, %v451_v5  ;;  %v479_v22 = vmul.f32 %v1066_v58, %v443_v9 }
  0xc1   : > { %v464_v7 = vmul.f32 %v1066_v58, %v428_v3  ;;  %v472_v18 = vmul.f32 %v1066_v58, %v436_v6 }
  0xc2   : > { %v549_v32 = vsel %vm286_vm0, %v479_v22, 0.0  ;;  %v573_v22 = vsel %vm286_vm0, %v1115_v8, 0.0 }
  0xc3   : > { %v394_v10 = vpop.f32.mrf.mxu2  ;;  %v504_v11 = vsel %vm286_vm0, %v464_v7, 0.0  ;;  %v414_v16 = vpop.f32.mrf.mxu3  ;;  %v528_v26 = vsel %vm286_vm0, %v472_v18, 0.0 }
  0xc4   : > { %v395_v14 = vadd.f32 %v1060_v54, %v394_v10  ;;  %v356_v15 = vpop.f32.mrf.mxu0  ;;  %502 = vadd.xlane.f32.xlu1 %v501_v12  ;;  %547 = vadd.xlane.f32.xlu0 %v546_v13  ;;  %v376_v17 = vpop.f32.mrf.mxu1  ;;  %v415_v19 = vadd.f32 %v1060_v54, %v414_v16 }
  0xc5   : > { %505 = vadd.xlane.f32.xlu2 %v504_v11  ;;  %v377_v21 = vadd.f32 %v1060_v54, %v376_v17  ;;  %v357_v24 = vadd.f32 %v1060_v54, %v356_v15 }
  0xc6   : > { %v444_v20 = vmax.f32 %v395_v14, 0.0  ;;  %v452_v23 = vmax.f32 %v415_v19, 0.0 }
  0xc7   : > { %v437_v29 = vmax.f32 %v377_v21, 0.0  ;;  %v429_v33 = vmax.f32 %v357_v24, 0.0 }
  0xc8   : > { %v480_v25 = vmul.f32 %v1066_v58, %v444_v20  ;;  %v1129_v27 = vmul.f32 %v1066_v58, %v452_v23  ;;  %v570_v23 = vsel %vm286_vm0, %v1101_v49, 0.0 }
  0xc9   : > { %v473_v42 = vmul.f32 %v1066_v58, %v437_v29  ;;  %v465_v44 = vmul.f32 %v1066_v58, %v429_v33 }
  0xca   : > { %v552_v28 = vsel %vm286_vm0, %v480_v25, 0.0 }
  0xcb   : > { %v396_v30 = vpop.f32.mrf.mxu2  ;;  %v416_v36 = vpop.f32.mrf.mxu3  ;;  %v531_v51 = vsel %vm286_vm0, %v473_v42, 0.0  ;;  %v507_v55 = vsel %vm286_vm0, %v465_v44, 0.0 }
  0xcc   : > { %v397_v34 = vadd.f32 %v1060_v54, %v396_v30  ;;  %550 = vadd.xlane.f32.xlu1 %v549_v32  ;;  %529 = vadd.xlane.f32.xlu0 %v528_v26  ;;  %v359_v35 = vpop.f32.mrf.mxu0  ;;  %v379_v37 = vpop.f32.mrf.mxu1  ;;  %v417_v39 = vadd.f32 %v1060_v54, %v416_v36 }
  0xcd   : > { %553 = vadd.xlane.f32.xlu2 %v552_v28  ;;  %v360_v38 = vadd.f32 %v1060_v54, %v359_v35  ;;  %v380_v41 = vadd.f32 %v1060_v54, %v379_v37  ;;  %v1175_v28 = vstv %s588_s6 }
  0xce   : > { %v445_v40 = vmax.f32 %v397_v34, 0.0  ;;  %v453_v43 = vmax.f32 %v417_v39, 0.0 }
  0xcf   : > { %v430_v46 = vmax.f32 %v360_v38, 0.0  ;;  %v438_v48 = vmax.f32 %v380_v41, 0.0 }
  0xd0   : > { %v481_v45 = vmul.f32 %v1066_v58, %v445_v40  ;;  %v489_v47 = vmul.f32 %v1066_v58, %v453_v43 }
  0xd1   : > { %v466_v61 = vmul.f32 %v1066_v58, %v430_v46  ;;  %v474_v1 = vmul.f32 %v1066_v58, %v438_v48 }
  0xd2   : > { %v555_v52 = vsel %vm286_vm0, %v481_v45, 0.0  ;;  %v579_v25 = vsel %vm286_vm0, %v489_v47, 0.0 }
  0xd3   : > { %v399_v50 = vpop.f32.mrf.mxu2  ;;  %v419_v57 = vpop.f32.mrf.mxu3  ;;  %v510_v6 = vsel %vm286_vm0, %v466_v61, 0.0  ;;  %v534_v10 = vsel %vm286_vm0, %v474_v1, 0.0 }
  0xd4   : > { %v400_v53 = vadd.f32 %v1060_v54, %v399_v50  ;;  %532 = vadd.xlane.f32.xlu1 %v531_v51  ;;  %556 = vadd.xlane.f32.xlu0 %v555_v52  ;;  %v361_v56 = vpop.f32.mrf.mxu0  ;;  %v381_v59 = vpop.f32.mrf.mxu1  ;;  %v420_v62 = vadd.f32 %v1060_v54, %v419_v57 }
  0xd5   : > { %508 = vadd.xlane.f32.xlu2 %v507_v55  ;;  %v362_v60 = vadd.f32 %v1060_v54, %v361_v56  ;;  %v382_v63 = vadd.f32 %v1060_v54, %v381_v59 }
  0xd6   : > { %v446_v0 = vmax.f32 %v400_v53, 0.0  ;;  %v454_v3 = vmax.f32 %v420_v62, 0.0 }
  0xd7   : > { %v431_v2 = vmax.f32 %v362_v60, 0.0  ;;  %v439_v4 = vmax.f32 %v382_v63, 0.0 }
  0xd8   : > { %v482_v5 = vmul.f32 %v1066_v58, %v446_v0  ;;  %v490_v9 = vmul.f32 %v1066_v58, %v454_v3 }
  0xd9   : > { %v467_v7 = vmul.f32 %v1066_v58, %v431_v2  ;;  %v475_v12 = vmul.f32 %v1066_v58, %v439_v4 }
  0xda   : > { %v558_v11 = vsel %vm286_vm0, %v482_v5, 0.0  ;;  %v582_v24 = vsel %vm286_vm0, %v490_v9, 0.0 }
  0xdb   : > { %v401_v13 = vpop.f32.mrf.mxu2  ;;  %v421_v15 = vpop.f32.mrf.mxu3  ;;  %v513_v20 = vsel %vm286_vm0, %v467_v7, 0.0  ;;  %v537_v8 = vsel %vm286_vm0, %v475_v12, 0.0 }
  0xdc   : > { %559 = vadd.xlane.f32.xlu1 %v558_v11  ;;  %511 = vadd.xlane.f32.xlu0 %v510_v6  ;;  %v402_v14 = vadd.f32 %v1060_v54, %v401_v13  ;;  %v422_v16 = vadd.f32 %v1060_v54, %v421_v15  ;;  %v567_v54 = vsel %vm286_vm0, %v1089_v31, 0.0 }
  0xdd   : > { %535 = vadd.xlane.f32.xlu2 %v534_v10 }
  0xde   : > { %v447_v17 = vmax.f32 %v402_v14, 0.0  ;;  %v455_v18 = vmax.f32 %v422_v16, 0.0 }
  0xe0   : > { %v483_v19 = vmul.f32 %v1066_v58, %v447_v17  ;;  %v491_v21 = vmul.f32 %v1066_v58, %v455_v18  ;;  %v576_v58 = vsel %vm286_vm0, %v1129_v27, 0.0 }
  0xe2   : > { %v561_v49 = vsel %vm286_vm0, %v483_v19, 0.0  ;;  %v585_v26 = vsel %vm286_vm0, %v491_v21, 0.0 }
  0xe4   : > { %514 = vadd.xlane.f32.xlu1 %v513_v20  ;;  %574 = vadd.xlane.f32.xlu0 %v573_v22 }
  0xe5   : > { %571 = vadd.xlane.f32.xlu2 %v570_v23 }
  0xec   : > { %568 = vadd.xlane.f32.xlu1 %v567_v54  ;;  %583 = vadd.xlane.f32.xlu0 %v582_v24 }
  0xed   : > { %580 = vadd.xlane.f32.xlu2 %v579_v25 }
  0xf4   : > { %577 = vadd.xlane.f32.xlu1 %v576_v58  ;;  %538 = vadd.xlane.f32.xlu0 %v537_v8 }
  0xf5   : > { %562 = vadd.xlane.f32.xlu2 %v561_v49 }
  0xfc   : > { %586 = vadd.xlane.f32.xlu1 %v585_v26 }
 0x117   : > { %v494_v31 = vpop.xlane.xlu0 %493  ;;  %v518_v30 = vpop.xlane.xlu2 %517 }
 0x118   : > { %v590_v29 = vadd.f32 %v1175_v28, %v494_v31  ;;  %v598_v7 = vadd.f32 %v1175_v28, %v518_v30 }
 0x11e   : > { %v542_v32 = vpop.xlane.xlu1 %541  ;;  %622 = vxpose.xlu2.b32.start [1/16] (narrow) %v590_v29, 8  ;;  %v692_v29 = vlaneseq }
 0x11f   : > { %v606_v27 = vadd.f32 %v1175_v28, %v542_v32  ;;  %v566_v33 = vpop.xlane.xlu0 %565 }
 0x120   : > { %v614_v12 = vadd.f32 %v1175_v28, %v566_v33  ;;  %vm694_vm2 = vcmp.lt.s32.totalorder %v692_v29, 256 }
 0x121   : > { %654 = vxpose.xlu0.b32.start [1/16] (narrow) %v606_v27, 8 }
 0x126   : > { %v545_v34 = vpop.xlane.xlu2 %544 }
 0x127   : > { %v607_v35 = vadd.f32 %v1175_v28, %v545_v34  ;;  %v500_v36 = vpop.xlane.xlu1 %499  ;;  %v497_v37 = vpop.xlane.xlu0 %496 }
 0x128   : > { %v591_v38 = vadd.f32 %v1175_v28, %v497_v37  ;;  %v592_v41 = vadd.f32 %v1175_v28, %v500_v36 }
 0x129   : > { %655 = vxpose.xlu0.b32.cont [2/16] (narrow) %v607_v35, 8 }
 0x12a   : > { %623 = vxpose.xlu2.b32.cont [2/16] (narrow) %v591_v38, 8 }
 0x12f   : > { %v524_v39 = vpop.xlane.xlu1 %523  ;;  %v521_v40 = vpop.xlane.xlu0 %520 }
 0x130   : > { %v527_v42 = vpop.xlane.xlu2 %526  ;;  %v599_v10 = vadd.f32 %v1175_v28, %v521_v40  ;;  %v600_v13 = vadd.f32 %v1175_v28, %v524_v39 }
 0x131   : > { %v601_v15 = vadd.f32 %v1175_v28, %v527_v42 }
 0x132   : > { %624 = vxpose.xlu2.b32.cont [3/16] (narrow) %v592_v41, 8 }
 0x137   : > { %v503_v43 = vpop.xlane.xlu1 %502  ;;  %v548_v44 = vpop.xlane.xlu0 %547 }
 0x138   : > { %v506_v45 = vpop.xlane.xlu2 %505  ;;  %v593_v46 = vadd.f32 %v1175_v28, %v503_v43  ;;  %v608_v47 = vadd.f32 %v1175_v28, %v548_v44 }
 0x139   : > { %v594_v51 = vadd.f32 %v1175_v28, %v506_v45 }
 0x13a   : > { %625 = vxpose.xlu2.b32.cont [4/16] (narrow) %v593_v46, 8  ;;  %656 = vxpose.xlu0.b32.cont [3/16] (narrow) %v608_v47, 8 }
 0x13f   : > { %v551_v48 = vpop.xlane.xlu1 %550  ;;  %v530_v50 = vpop.xlane.xlu0 %529 }
 0x140   : > { %v554_v52 = vpop.xlane.xlu2 %553  ;;  %v609_v53 = vadd.f32 %v1175_v28, %v551_v48  ;;  %v602_v17 = vadd.f32 %v1175_v28, %v530_v50 }
 0x141   : > { %v610_v57 = vadd.f32 %v1175_v28, %v554_v52 }
 0x142   : > { %626 = vxpose.xlu2.b32.cont [5/16] (narrow) %v594_v51, 8  ;;  %657 = vxpose.xlu0.b32.cont [4/16] (narrow) %v609_v53, 8 }
 0x147   : > { %v533_v55 = vpop.xlane.xlu1 %532  ;;  %v557_v56 = vpop.xlane.xlu0 %556 }
 0x148   : > { %v509_v59 = vpop.xlane.xlu2 %508  ;;  %v611_v63 = vadd.f32 %v1175_v28, %v557_v56  ;;  %v603_v20 = vadd.f32 %v1175_v28, %v533_v55 }
 0x149   : > { %v595_v60 = vadd.f32 %v1175_v28, %v509_v59 }
 0x14a   : > { %658 = vxpose.xlu0.b32.cont [5/16] (narrow) %v610_v57, 8 }
 0x14b   : > { %627 = vxpose.xlu2.b32.cont [6/16] (narrow) %v595_v60, 8 }
 0x14f   : > { %v560_v61 = vpop.xlane.xlu1 %559  ;;  %v512_v62 = vpop.xlane.xlu0 %511 }
 0x150   : > { %v536_v0 = vpop.xlane.xlu2 %535  ;;  %v596_v1 = vadd.f32 %v1175_v28, %v512_v62  ;;  %v612_v2 = vadd.f32 %v1175_v28, %v560_v61 }
 0x151   : > { %v604_v24 = vadd.f32 %v1175_v28, %v536_v0 }
 0x152   : > { %659 = vxpose.xlu0.b32.cont [6/16] (narrow) %v611_v63, 8 }
 0x153   : > { %628 = vxpose.xlu2.b32.cont [7/16] (narrow) %v596_v1, 8 }
 0x157   : > { %v515_v3 = vpop.xlane.xlu1 %514  ;;  %v575_v19 = vpop.xlane.xlu0 %574 }
 0x158   : > { %v572_v4 = vpop.xlane.xlu2 %571  ;;  %v597_v5 = vadd.f32 %v1175_v28, %v515_v3  ;;  %v617_v21 = vadd.f32 %v1175_v28, %v575_v19 }
 0x159   : > { %v616_v18 = vadd.f32 %v1175_v28, %v572_v4 }
 0x15a   : > { %660 = vxpose.xlu0.b32.cont [7/16] (narrow) %v612_v2, 8 }
 0x15b   : > { %629 = vxpose.xlu2.b32.cont [8/16] (narrow) %v597_v5, 8 }
 0x15f   : > { %v569_v14 = vpop.xlane.xlu1 %568  ;;  %v584_v22 = vpop.xlane.xlu0 %583 }
 0x160   : > { %v581_v6 = vpop.xlane.xlu2 %580  ;;  %v615_v16 = vadd.f32 %v1175_v28, %v569_v14  ;;  %v620_v49 = vadd.f32 %v1175_v28, %v584_v22 }
 0x161   : > { %v619_v58 = vadd.f32 %v1175_v28, %v581_v6 }
 0x163   : > { %630 = vxpose.xlu2.b32.cont [9/16] (narrow) %v598_v7, 8 }
 0x167   : > { %v578_v23 = vpop.xlane.xlu1 %577  ;;  %v539_v25 = vpop.xlane.xlu0 %538 }
 0x168   : > { %v563_v9 = vpop.xlane.xlu2 %562  ;;  %v618_v54 = vadd.f32 %v1175_v28, %v578_v23  ;;  %v605_v8 = vadd.f32 %v1175_v28, %v539_v25 }
 0x169   : > { %v613_v11 = vadd.f32 %v1175_v28, %v563_v9 }
 0x16b   : > { %661 = vxpose.xlu0.b32.cont [8/16] (narrow) %v613_v11, 8  ;;  %631 = vxpose.xlu2.b32.cont [10/16] (narrow) %v599_v10, 8 }
 0x16f   : > { %v587_v26 = vpop.xlane.xlu1 %586 }
 0x170   : > { %v621_v31 = vadd.f32 %v1175_v28, %v587_v26 }
 0x173   : > { %662 = vxpose.xlu0.b32.cont [9/16] (narrow) %v614_v12, 8  ;;  %632 = vxpose.xlu2.b32.cont [11/16] (narrow) %v600_v13, 8 }
 0x17b   : > { %663 = vxpose.xlu0.b32.cont [10/16] (narrow) %v615_v16, 8  ;;  %633 = vxpose.xlu2.b32.cont [12/16] (narrow) %v601_v15, 8 }
 0x183   : > { %664 = vxpose.xlu0.b32.cont [11/16] (narrow) %v616_v18, 8  ;;  %634 = vxpose.xlu2.b32.cont [13/16] (narrow) %v602_v17, 8 }
 0x18b   : > { %635 = vxpose.xlu2.b32.cont [14/16] (narrow) %v603_v20, 8  ;;  %665 = vxpose.xlu0.b32.cont [12/16] (narrow) %v617_v21, 8 }
 0x193   : > { %636 = vxpose.xlu2.b32.cont [15/16] (narrow) %v604_v24, 8  ;;  %666 = vxpose.xlu0.b32.cont [13/16] (narrow) %v618_v54, 8 }
 0x19b   : > { %667 = vxpose.xlu0.b32.cont [14/16] (narrow) %v619_v58, 8  ;;  %637 = vxpose.xlu2.b32.end [16/16] (narrow) %v605_v8, 8 }
 0x1a3   : > { %668 = vxpose.xlu0.b32.cont [15/16] (narrow) %v620_v49, 8 }
 0x1ab   : > { %669 = vxpose.xlu0.b32.end [16/16] (narrow) %v621_v31, 8 }
 0x1bc   : > { %v638_v32 = vpop.trf.xlu2 }
 0x1d7   : > { %v670_v30 = vpop.trf.xlu0 }
 0x1d8   : > { %v688_v27 = vrot.slane %v670_v30, 7 }
 0x1da   : > { %v690_v28 = vsel %vm689_vm1, %v638_v32, %v688_v27 }
 0x1db   : > { %696 = vst.msk [vmem:[%s219_s13] sm:$0x3] %vm694_vm2, %v690_v28 }
 0x1dc   : > { %873 = shalt.err (!%p870_p3)
}
 0x1dd   : > { %805 = dma.vmem_to_hbm [thread:$0]  (%p981_p5), %s711_s14, 32, %s713_s15, %s698_s16  }
 0x1de PF: > { %p811_p4 = scmp.ge.s32.totalorder %s908_s23, 2  ;;  %s724_s6 = sand.u32 1, %s896_s20  }
 0x1df   : > { %s725_s7 = scalar_lea.sflag [#allocation4], %s724_s6 }
 0x1e0   : > { %p808_p7 = pnand %p811_p4, %p985_p6 }
 0x1e2   : > { %p809_p8 = pneg %p808_p7 }
 0x1e4   : > { %891 = dma.done.wait (%p809_p8), %s725_s7, 32  }
 0x1e5   : > { %893 = vsyncadd (%p809_p8), %s725_s7, 4294967264  ;;  %p16_p9 = scmp.ge.s32.totalorder %s968_s25, 4   ;;  %s1249_s20 = smov %s900_s21 }
 0x1e6   : > { %s1250_s21 = smov %s904_s22  ;;  %s1251_s22 = smov %s979_s28 }
 0x1e7   : > { %s1252_s23 = smov %s968_s25  ;;  %18 = sbr.rel (!%p16_p9) target bundleno = 5 (0x5), region = 75 }
 0x1ec   :  { %731 = vsyncpa [#allocation4], 1 }
 0x1ed   :  { %733 = vsyncpa [#allocation4 + $0x1], 1 }

</bundles_post_ra>
